<compile_context>
chip_gen: v7x
topology: tpu7x:2x2x1
jax: 0.10.0
libtpu: 0.0.40
codegen_flags: <defaults>
</compile_context>

<pallas_src>
import functools

import jax
import jax.numpy as jnp
from jax.experimental import pallas as pl
from jax.experimental.pallas import tpu as pltpu


def _branch_kernel(x_ref, wt_ref, b_ref, bn_ref, o_ref, *, eps, rows_per_channel):
    """One branch: out = BN(fc(relu(x))) on the flattened (3N, insize) slab.

    Row r of the slab corresponds to BatchNorm1d channel (r % 3); per-channel
    batch statistics are computed with row masks (no transpose needed).
    """
    br = pl.program_id(0)           # branch: 0 -> fc1/bn1, 1 -> fc2/bn2

    x = x_ref[0]                                                   # (3N, insize)
    z = jnp.maximum(x, jnp.zeros_like(x))                          # ReLU before linear
    h = jnp.dot(z, wt_ref[0], preferred_element_type=jnp.float32)  # MXU, f32 acc
    h = h + b_ref[0]                                               # (3N, outsize)

    rows, cols = h.shape
    inv_n = jnp.float32(1.0 / (rows_per_channel * cols))

    # Channel id per row (row-major (N, 3) flatten -> channel = row % 3).
    ch = jax.lax.broadcasted_iota(jnp.int32, (rows, 1), 0) % 3
    m0 = (ch == 0).astype(jnp.float32)                             # (3N, 1) masks
    m1 = (ch == 1).astype(jnp.float32)
    m2 = (ch == 2).astype(jnp.float32)

    # Per-channel mean: one full reduce per channel (masked).
    mean0 = jnp.sum(h * m0) * inv_n
    mean1 = jnp.sum(h * m1) * inv_n
    mean2 = jnp.sum(h * m2) * inv_n
    mean_map = m0 * mean0 + m1 * mean1 + m2 * mean2                # (3N, 1)

    d = h - mean_map                                               # stable formulation
    dd = d * d
    var0 = jnp.sum(dd * m0) * inv_n
    var1 = jnp.sum(dd * m1) * inv_n
    var2 = jnp.sum(dd * m2) * inv_n

    eps_f = jnp.float32(eps)
    inv0 = jax.lax.rsqrt(var0 + eps_f)                             # EUP, effectively free
    inv1 = jax.lax.rsqrt(var1 + eps_f)
    inv2 = jax.lax.rsqrt(var2 + eps_f)

    # gamma/beta scalars from the packed 1-D SMEM array:
    # [g1(3), g2(3), be1(3), be2(3)]
    base = br * 3
    scale_map = (m0 * (inv0 * bn_ref[base + 0])
                 + m1 * (inv1 * bn_ref[base + 1])
                 + m2 * (inv2 * bn_ref[base + 2]))
    shift_map = (m0 * bn_ref[6 + base + 0]
                 + m1 * bn_ref[6 + base + 1]
                 + m2 * bn_ref[6 + base + 2])

    o_ref[0] = (d * scale_map + shift_map).astype(o_ref.dtype)


def prepare_output_linear_params(w1, b1, g1, be1, w2, b2, g2, be2):
    """One-time parameter prep (hoisted out of the forward path)."""
    wt = jnp.stack([w1.T, w2.T])                                   # (2, insize, outsize)
    bias = jnp.stack([b1, b2]).reshape(2, 1, -1)                   # (2, 1, outsize)
    bn = jnp.concatenate([g1, g2, be1, be2]).astype(jnp.float32)   # (12,) for SMEM
    return wt, bias, bn


def _vmem_limit_bytes(rows, insize, outsize):
    # Double-buffered input/weight/bias/output blocks + headroom for the f32
    # h/d intermediates.  Floor 32 MiB (raises v5e's 16 MiB scoped default),
    # cap 64 MiB (v7x physical VMEM per TensorCore).
    blk = 4 * (rows * insize + insize * outsize + outsize + rows * outsize)
    need = 2 * blk + 8 * 4 * rows * outsize
    return int(min(64 << 20, max(32 << 20, need)))


def output_linear_forward(x0, wt, bias, bn, eps=1e-5):
    """Pallas implementation of OutputLinear.forward.

    x0:   (2, N, 3, insize) stacked pair (x0[0] -> fc1/bn1, x0[1] -> fc2/bn2)
    wt:   (2, insize, outsize)  pre-transposed, stacked weights
    bias: (2, 1, outsize)
    bn:   (12,) = [gamma1(3), gamma2(3), beta1(3), beta2(3)]
    Returns (x, y), each (N, 3, outsize).
    """
    two, N, C, insize = x0.shape
    assert two == 2 and C == 3
    outsize = wt.shape[-1]
    rows = N * C                                                    # 3N

    # Free, contiguous reshape — no HBM transpose.
    x_flat = x0.reshape(2, rows, insize)

    out = pl.pallas_call(
        functools.partial(_branch_kernel, eps=eps, rows_per_channel=N),
        out_shape=jax.ShapeDtypeStruct((2, rows, outsize), x0.dtype),
        grid=(2,),
        in_specs=[
            pl.BlockSpec((1, rows, insize), lambda br: (br, 0, 0)),
            pl.BlockSpec((1, insize, outsize), lambda br: (br, 0, 0)),
            pl.BlockSpec((1, 1, outsize), lambda br: (br, 0, 0)),
            pl.BlockSpec(memory_space=pltpu.MemorySpace.SMEM),      # bn (12,)
        ],
        out_specs=pl.BlockSpec((1, rows, outsize), lambda br: (br, 0, 0)),
        compiler_params=pltpu.CompilerParams(
            dimension_semantics=("parallel",),                      # 2 TCs on v7x
            vmem_limit_bytes=_vmem_limit_bytes(rows, insize, outsize),
        ),
    )(x_flat, wt, bias, bn)

    out = out.reshape(2, N, C, outsize)                             # free reshape
    return out[0], out[1]


def _reference(x0, w1, b1, g1, be1, w2, b2, g2, be2, eps=1e-5):
    """Pure-JAX reference mirroring the PyTorch math (training-mode BN)."""
    def branch(x, w, b, g, be):
        h = jnp.maximum(x, 0.0) @ w.T + b                           # (N, 3, outsize)
        mean = jnp.mean(h, axis=(0, 2), keepdims=True)
        var = jnp.mean((h - mean) ** 2, axis=(0, 2), keepdims=True)
        return (h - mean) / jnp.sqrt(var + eps) * g[None, :, None] + be[None, :, None]

    return (branch(x0[0], w1, b1, g1, be1),
            branch(x0[1], w2, b2, g2, be2))


if __name__ == "__main__":
    key = jax.random.PRNGKey(0)
    ks = jax.random.split(key, 9)

    N, C, insize, outsize = 8, 3, 32, 128   # outsize=128 -> lane-dense output stores

    x0 = jax.random.normal(ks[0], (2, N, C, insize), dtype=jnp.float32)
    w1 = jax.random.normal(ks[1], (outsize, insize), dtype=jnp.float32) * 0.1
    b1 = jax.random.normal(ks[2], (outsize,), dtype=jnp.float32)
    w2 = jax.random.normal(ks[3], (outsize, insize), dtype=jnp.float32) * 0.1
    b2 = jax.random.normal(ks[4], (outsize,), dtype=jnp.float32)
    g1 = jax.random.normal(ks[5], (C,), dtype=jnp.float32) + 1.0
    be1 = jax.random.normal(ks[6], (C,), dtype=jnp.float32)
    g2 = jax.random.normal(ks[7], (C,), dtype=jnp.float32) + 1.0
    be2 = jax.random.normal(ks[8], (C,), dtype=jnp.float32)

    # One-time parameter prep (module-init time cost, not per forward).
    wt, bias, bn = prepare_output_linear_params(w1, b1, g1, be1, w2, b2, g2, be2)
    wt = jax.block_until_ready(wt)

    x_out, y_out = output_linear_forward(x0, wt, bias, bn)
    x_out = jax.block_until_ready(x_out)
    y_out = jax.block_until_ready(y_out)

    x_ref, y_ref = _reference(x0, w1, b1, g1, be1, w2, b2, g2, be2)

    assert x_out.shape == (N, C, outsize) and y_out.shape == (N, C, outsize)
    assert jnp.allclose(x_out, x_ref, atol=1e-4, rtol=1e-4), "branch-1 mismatch"
    assert jnp.allclose(y_out, y_ref, atol=1e-4, rtol=1e-4), "branch-2 mismatch"

    print("KERNEL_OK")
</pallas_src>

<mosaic_0001>
module attributes {stable_mosaic.version = 11 : i64} {
  func.func @_branch_kernel(%arg0: i32, %arg1: memref<1x24x32xf32, #tpu.memory_space<vmem>>, %arg2: memref<1x32x128xf32, #tpu.memory_space<vmem>>, %arg3: memref<1x1x128xf32, #tpu.memory_space<vmem>>, %arg4: memref<12xf32, #tpu.memory_space<smem>>, %arg5: memref<1x24x128xf32, #tpu.memory_space<vmem>>) attributes {dimension_semantics = [#tpu.dimension_semantics<parallel>], iteration_bounds = array<i64: 2>, scalar_prefetch = 0 : i64, scratch_operands = 0 : i64, tpu.core_type = #tpu.core_type<tc>, window_params = [{transform_indices = @transform_0, window_bounds = array<i64: 1, 24, 32>}, {transform_indices = @transform_1, window_bounds = array<i64: 1, 32, 128>}, {transform_indices = @transform_2, window_bounds = array<i64: 1, 1, 128>}, {transform_indices = @transform_3, window_bounds = array<i64: 12>}, {transform_indices = @transform_4, window_bounds = array<i64: 1, 24, 128>}]} {
    %c0 = arith.constant 0 : index
    %c0_0 = arith.constant 0 : index
    %c0_1 = arith.constant 0 : index
    %0 = vector.load %arg1[%c0, %c0_0, %c0_1] : memref<1x24x32xf32, #tpu.memory_space<vmem>>, vector<1x24x32xf32>
    %1 = vector.shape_cast %0 : vector<1x24x32xf32> to vector<24x32xf32>
    %cst = arith.constant 0.000000e+00 : f32
    %2 = vector.broadcast %cst : f32 to vector<24x32xf32>
    %3 = arith.maximumf %1, %2 : vector<24x32xf32>
    %c0_2 = arith.constant 0 : index
    %c0_3 = arith.constant 0 : index
    %c0_4 = arith.constant 0 : index
    %4 = vector.load %arg2[%c0_2, %c0_3, %c0_4] : memref<1x32x128xf32, #tpu.memory_space<vmem>>, vector<1x32x128xf32>
    %5 = vector.shape_cast %4 : vector<1x32x128xf32> to vector<32x128xf32>
    %cst_5 = arith.constant dense<0.000000e+00> : vector<24x128xf32>
    %6 = tpu.matmul %3, %5, %cst_5 {dimension_numbers = #tpu.dot_dimension_numbers<[1], [0], [0], [1], [0, 0, 1, 1], [], []>} : vector<24x32xf32>, vector<32x128xf32>, vector<24x128xf32> -> vector<24x128xf32>
    %c0_6 = arith.constant 0 : index
    %c0_7 = arith.constant 0 : index
    %c0_8 = arith.constant 0 : index
    %7 = vector.load %arg3[%c0_6, %c0_7, %c0_8] : memref<1x1x128xf32, #tpu.memory_space<vmem>>, vector<1x1x128xf32>
    %8 = vector.shape_cast %7 : vector<1x1x128xf32> to vector<1x128xf32>
    %9 = vector.broadcast %8 : vector<1x128xf32> to vector<24x128xf32>
    %10 = arith.addf %6, %9 : vector<24x128xf32>
    %11 = tpu.iota {dimensions = array<i32: 0>} : vector<24x1xi32>
    %c3_i32 = arith.constant 3 : i32
    %c0_i32 = arith.constant 0 : i32
    %12 = arith.cmpi eq, %c3_i32, %c0_i32 : i32
    %c1_i32 = arith.constant 1 : i32
    %13 = arith.select %12, %c1_i32, %c3_i32 : i32
    %14 = vector.broadcast %13 : i32 to vector<24x1xi32>
    %15 = arith.remsi %11, %14 : vector<24x1xi32>
    %c0_i32_9 = arith.constant 0 : i32
    %16 = vector.broadcast %c0_i32_9 : i32 to vector<24x1xi32>
    %17 = arith.cmpi ne, %15, %16 : vector<24x1xi32>
    %c0_i32_10 = arith.constant 0 : i32
    %18 = vector.broadcast %c0_i32_10 : i32 to vector<24x1xi32>
    %19 = arith.cmpi slt, %15, %18 : vector<24x1xi32>
    %c0_i32_11 = arith.constant 0 : i32
    %20 = arith.cmpi slt, %13, %c0_i32_11 : i32
    %21 = vector.broadcast %20 : i1 to vector<24x1xi1>
    %22 = vector.broadcast %21 : vector<24x1xi1> to vector<24x1xi1>
    %23 = arith.xori %19, %22 : vector<24x1xi1>
    %24 = arith.andi %23, %17 : vector<24x1xi1>
    %25 = vector.broadcast %13 : i32 to vector<24x1xi32>
    %26 = arith.addi %15, %25 : vector<24x1xi32>
    %27 = arith.select %24, %26, %15 : vector<24x1xi1>, vector<24x1xi32>
    %c0_i32_12 = arith.constant 0 : i32
    %28 = vector.broadcast %c0_i32_12 : i32 to vector<24x1xi32>
    %29 = arith.cmpi eq, %27, %28 : vector<24x1xi32>
    %30 = arith.extui %29 : vector<24x1xi1> to vector<24x1xi32>
    %31 = arith.sitofp %30 : vector<24x1xi32> to vector<24x1xf32>
    %c1_i32_13 = arith.constant 1 : i32
    %32 = vector.broadcast %c1_i32_13 : i32 to vector<24x1xi32>
    %33 = arith.cmpi eq, %27, %32 : vector<24x1xi32>
    %34 = arith.extui %33 : vector<24x1xi1> to vector<24x1xi32>
    %35 = arith.sitofp %34 : vector<24x1xi32> to vector<24x1xf32>
    %c2_i32 = arith.constant 2 : i32
    %36 = vector.broadcast %c2_i32 : i32 to vector<24x1xi32>
    %37 = arith.cmpi eq, %27, %36 : vector<24x1xi32>
    %38 = arith.extui %37 : vector<24x1xi1> to vector<24x1xi32>
    %39 = arith.sitofp %38 : vector<24x1xi32> to vector<24x1xf32>
    %40 = vector.broadcast %31 : vector<24x1xf32> to vector<24x128xf32>
    %41 = arith.mulf %10, %40 : vector<24x128xf32>
    %42 = vector.shape_cast %41 : vector<24x128xf32> to vector<1x24x128xf32>
    %cst_14 = arith.constant dense<0.000000e+00> : vector<1xf32>
    %43 = vector.multi_reduction <add>, %42, %cst_14 [1, 2] : vector<1x24x128xf32> to vector<1xf32>
    %44 = vector.shape_cast %43 : vector<1xf32> to vector<1x1x1xf32>
    %45 = vector.extract %44[0, 0, 0] : f32 from vector<1x1x1xf32>
    %cst_15 = arith.constant 9.765625E-4 : f32
    %46 = arith.mulf %45, %cst_15 : f32
    %47 = vector.broadcast %35 : vector<24x1xf32> to vector<24x128xf32>
    %48 = arith.mulf %10, %47 : vector<24x128xf32>
    %49 = vector.shape_cast %48 : vector<24x128xf32> to vector<1x24x128xf32>
    %cst_16 = arith.constant dense<0.000000e+00> : vector<1xf32>
    %50 = vector.multi_reduction <add>, %49, %cst_16 [1, 2] : vector<1x24x128xf32> to vector<1xf32>
    %51 = vector.shape_cast %50 : vector<1xf32> to vector<1x1x1xf32>
    %52 = vector.extract %51[0, 0, 0] : f32 from vector<1x1x1xf32>
    %cst_17 = arith.constant 9.765625E-4 : f32
    %53 = arith.mulf %52, %cst_17 : f32
    %54 = vector.broadcast %39 : vector<24x1xf32> to vector<24x128xf32>
    %55 = arith.mulf %10, %54 : vector<24x128xf32>
    %56 = vector.shape_cast %55 : vector<24x128xf32> to vector<1x24x128xf32>
    %cst_18 = arith.constant dense<0.000000e+00> : vector<1xf32>
    %57 = vector.multi_reduction <add>, %56, %cst_18 [1, 2] : vector<1x24x128xf32> to vector<1xf32>
    %58 = vector.shape_cast %57 : vector<1xf32> to vector<1x1x1xf32>
    %59 = vector.extract %58[0, 0, 0] : f32 from vector<1x1x1xf32>
    %cst_19 = arith.constant 9.765625E-4 : f32
    %60 = arith.mulf %59, %cst_19 : f32
    %61 = vector.broadcast %46 : f32 to vector<24x1xf32>
    %62 = arith.mulf %31, %61 : vector<24x1xf32>
    %63 = vector.broadcast %53 : f32 to vector<24x1xf32>
    %64 = arith.mulf %35, %63 : vector<24x1xf32>
    %65 = arith.addf %62, %64 : vector<24x1xf32>
    %66 = vector.broadcast %60 : f32 to vector<24x1xf32>
    %67 = arith.mulf %39, %66 : vector<24x1xf32>
    %68 = arith.addf %65, %67 : vector<24x1xf32>
    %69 = vector.broadcast %68 : vector<24x1xf32> to vector<24x128xf32>
    %70 = arith.subf %10, %69 : vector<24x128xf32>
    %71 = arith.mulf %70, %70 : vector<24x128xf32>
    %72 = vector.broadcast %31 : vector<24x1xf32> to vector<24x128xf32>
    %73 = arith.mulf %71, %72 : vector<24x128xf32>
    %74 = vector.shape_cast %73 : vector<24x128xf32> to vector<1x24x128xf32>
    %cst_20 = arith.constant dense<0.000000e+00> : vector<1xf32>
    %75 = vector.multi_reduction <add>, %74, %cst_20 [1, 2] : vector<1x24x128xf32> to vector<1xf32>
    %76 = vector.shape_cast %75 : vector<1xf32> to vector<1x1x1xf32>
    %77 = vector.extract %76[0, 0, 0] : f32 from vector<1x1x1xf32>
    %cst_21 = arith.constant 9.765625E-4 : f32
    %78 = arith.mulf %77, %cst_21 : f32
    %79 = vector.broadcast %35 : vector<24x1xf32> to vector<24x128xf32>
    %80 = arith.mulf %71, %79 : vector<24x128xf32>
    %81 = vector.shape_cast %80 : vector<24x128xf32> to vector<1x24x128xf32>
    %cst_22 = arith.constant dense<0.000000e+00> : vector<1xf32>
    %82 = vector.multi_reduction <add>, %81, %cst_22 [1, 2] : vector<1x24x128xf32> to vector<1xf32>
    %83 = vector.shape_cast %82 : vector<1xf32> to vector<1x1x1xf32>
    %84 = vector.extract %83[0, 0, 0] : f32 from vector<1x1x1xf32>
    %cst_23 = arith.constant 9.765625E-4 : f32
    %85 = arith.mulf %84, %cst_23 : f32
    %86 = vector.broadcast %39 : vector<24x1xf32> to vector<24x128xf32>
    %87 = arith.mulf %71, %86 : vector<24x128xf32>
    %88 = vector.shape_cast %87 : vector<24x128xf32> to vector<1x24x128xf32>
    %cst_24 = arith.constant dense<0.000000e+00> : vector<1xf32>
    %89 = vector.multi_reduction <add>, %88, %cst_24 [1, 2] : vector<1x24x128xf32> to vector<1xf32>
    %90 = vector.shape_cast %89 : vector<1xf32> to vector<1x1x1xf32>
    %91 = vector.extract %90[0, 0, 0] : f32 from vector<1x1x1xf32>
    %cst_25 = arith.constant 9.765625E-4 : f32
    %92 = arith.mulf %91, %cst_25 : f32
    %cst_26 = arith.constant 9.99999974E-6 : f32
    %93 = arith.addf %78, %cst_26 : f32
    %94 = math.rsqrt %93 : f32
    %cst_27 = arith.constant 9.99999974E-6 : f32
    %95 = arith.addf %85, %cst_27 : f32
    %96 = math.rsqrt %95 : f32
    %cst_28 = arith.constant 9.99999974E-6 : f32
    %97 = arith.addf %92, %cst_28 : f32
    %98 = math.rsqrt %97 : f32
    %c3_i32_29 = arith.constant 3 : i32
    %99 = arith.muli %arg0, %c3_i32_29 : i32
    %c0_i32_30 = arith.constant 0 : i32
    %100 = arith.addi %99, %c0_i32_30 : i32
    %101 = arith.index_cast %100 : i32 to index
    %102 = memref.load %arg4[%101] : memref<12xf32, #tpu.memory_space<smem>>
    %103 = arith.mulf %94, %102 : f32
    %104 = vector.broadcast %103 : f32 to vector<24x1xf32>
    %105 = arith.mulf %31, %104 : vector<24x1xf32>
    %c1_i32_31 = arith.constant 1 : i32
    %106 = arith.addi %99, %c1_i32_31 : i32
    %107 = arith.index_cast %106 : i32 to index
    %108 = memref.load %arg4[%107] : memref<12xf32, #tpu.memory_space<smem>>
    %109 = arith.mulf %96, %108 : f32
    %110 = vector.broadcast %109 : f32 to vector<24x1xf32>
    %111 = arith.mulf %35, %110 : vector<24x1xf32>
    %112 = arith.addf %105, %111 : vector<24x1xf32>
    %c2_i32_32 = arith.constant 2 : i32
    %113 = arith.addi %99, %c2_i32_32 : i32
    %114 = arith.index_cast %113 : i32 to index
    %115 = memref.load %arg4[%114] : memref<12xf32, #tpu.memory_space<smem>>
    %116 = arith.mulf %98, %115 : f32
    %117 = vector.broadcast %116 : f32 to vector<24x1xf32>
    %118 = arith.mulf %39, %117 : vector<24x1xf32>
    %119 = arith.addf %112, %118 : vector<24x1xf32>
    %c6_i32 = arith.constant 6 : i32
    %120 = arith.addi %c6_i32, %99 : i32
    %c0_i32_33 = arith.constant 0 : i32
    %121 = arith.addi %120, %c0_i32_33 : i32
    %122 = arith.index_cast %121 : i32 to index
    %123 = memref.load %arg4[%122] : memref<12xf32, #tpu.memory_space<smem>>
    %124 = vector.broadcast %123 : f32 to vector<24x1xf32>
    %125 = arith.mulf %31, %124 : vector<24x1xf32>
    %c6_i32_34 = arith.constant 6 : i32
    %126 = arith.addi %c6_i32_34, %99 : i32
    %c1_i32_35 = arith.constant 1 : i32
    %127 = arith.addi %126, %c1_i32_35 : i32
    %128 = arith.index_cast %127 : i32 to index
    %129 = memref.load %arg4[%128] : memref<12xf32, #tpu.memory_space<smem>>
    %130 = vector.broadcast %129 : f32 to vector<24x1xf32>
    %131 = arith.mulf %35, %130 : vector<24x1xf32>
    %132 = arith.addf %125, %131 : vector<24x1xf32>
    %c6_i32_36 = arith.constant 6 : i32
    %133 = arith.addi %c6_i32_36, %99 : i32
    %c2_i32_37 = arith.constant 2 : i32
    %134 = arith.addi %133, %c2_i32_37 : i32
    %135 = arith.index_cast %134 : i32 to index
    %136 = memref.load %arg4[%135] : memref<12xf32, #tpu.memory_space<smem>>
    %137 = vector.broadcast %136 : f32 to vector<24x1xf32>
    %138 = arith.mulf %39, %137 : vector<24x1xf32>
    %139 = arith.addf %132, %138 : vector<24x1xf32>
    %140 = vector.broadcast %119 : vector<24x1xf32> to vector<24x128xf32>
    %141 = arith.mulf %70, %140 : vector<24x128xf32>
    %142 = vector.broadcast %139 : vector<24x1xf32> to vector<24x128xf32>
    %143 = arith.addf %141, %142 : vector<24x128xf32>
    %c0_38 = arith.constant 0 : index
    %c0_39 = arith.constant 0 : index
    %c0_40 = arith.constant 0 : index
    %144 = vector.load %arg5[%c0_38, %c0_39, %c0_40] : memref<1x24x128xf32, #tpu.memory_space<vmem>>, vector<1x24x128xf32>
    %145 = vector.shape_cast %144 : vector<1x24x128xf32> to vector<24x128xf32>
    %146 = vector.shape_cast %143 : vector<24x128xf32> to vector<1x24x128xf32>
    tpu.vector_store %arg5[%c0_38, %c0_39, %c0_40], %146 {strides = array<i32>} : memref<1x24x128xf32, #tpu.memory_space<vmem>>, vector<1x24x128xf32>,
    return
  }
  func.func @transform_0(%arg0: i32) -> (i32, i32, i32) {
    %c0_i32 = arith.constant 0 : i32
    %c0_i32_0 = arith.constant 0 : i32
    %c0_i32_1 = arith.constant 0 : i32
    return %arg0, %c0_i32, %c0_i32_0 : i32, i32, i32
  }
  func.func @transform_1(%arg0: i32) -> (i32, i32, i32) {
    %c0_i32 = arith.constant 0 : i32
    %c0_i32_0 = arith.constant 0 : i32
    %c0_i32_1 = arith.constant 0 : i32
    return %arg0, %c0_i32, %c0_i32_0 : i32, i32, i32
  }
  func.func @transform_2(%arg0: i32) -> (i32, i32, i32) {
    %c0_i32 = arith.constant 0 : i32
    %c0_i32_0 = arith.constant 0 : i32
    %c0_i32_1 = arith.constant 0 : i32
    return %arg0, %c0_i32, %c0_i32_0 : i32, i32, i32
  }
  func.func @transform_3(%arg0: i32) -> i32 {
    %c0_i32 = arith.constant 0 : i32
    %c0_i32_0 = arith.constant 0 : i32
    return %c0_i32 : i32
  }
  func.func @transform_4(%arg0: i32) -> (i32, i32, i32) {
    %c0_i32 = arith.constant 0 : i32
    %c0_i32_0 = arith.constant 0 : i32
    %c0_i32_1 = arith.constant 0 : i32
    return %arg0, %c0_i32, %c0_i32_0 : i32, i32, i32
  }
}

</mosaic_0001>

<bundles_post_ra>
// kernel: tpu_custom_call.1
= control target key start
LH: loop header
LB: loop body
LE: loop exit
PB: predicated region body
PF: predicated region fallthrough
CT: control target
= control target key end

     0   :  { %s1519_s0 = inlined_call_operand.hbm [shape: f32[2,24,32], index: 0, kind: input, shape index: {}]   ;;  %s1520_s1 = inlined_call_operand.hbm [shape: f32[2,32,128], index: 1, kind: input, shape index: {}]   ;;  %s1521_s2 = inlined_call_operand.vmem [shape: f32[2,1,128], index: 2, kind: input, shape index: {}]   ;;  %s1522_s3 = inlined_call_operand.vmem [shape: f32[12], index: 3, kind: input, shape index: {}]   ;;  %s1523_s4 = inlined_call_operand.hbm [shape: f32[2,24,128], index: 4, kind: output, shape index: {}]  }
   0x1   :  { %1527 = sst [smem:[#allocation14_spill]] %s1519_s0 }
   0x2   :  { %9 = vsyncpa [#allocation3], 0 }
   0x3   :  { %11 = vsyncpa [#allocation3 + $0x1], 0 }
   0x4   :  { %12 = vsyncpa [#allocation7], 0 }
   0x5   :  { %14 = vsyncpa [#allocation7 + $0x1], 0 }
   0x6   :  { %15 = vsyncpa [#allocation5], 0 }
   0x7   :  { %16 = vsyncpa [#allocation4], 0 }
   0x8   :  { %18 = vsyncpa [#allocation4 + $0x1], 0  ;;  %s1139_s15 = smov 0   ;;  %s1141_s16 = smov 0  }
   0x9   :  { %s1143_s17 = smov 0   ;;  %s1145_s18 = smov 0  }
   0xa LB: > { %s1160_s19 = sadd.s32 4294967295, %s1101_s18   ;;  %s787_s20 = sadd.s32 4294967294, %s1101_s18   ;;  %s1101_s18 = sphi %s1145_s18, %s1545_s18   ;;  %s1097_s17 = sphi %s1143_s17, %s1544_s17   ;;  %s1093_s16 = sphi %s1141_s16, %s1543_s16   ;;  %s1089_s15 = sphi %s1139_s15, %s1542_s15  }
   0xb   : > { %s1164_s21 = sadd.s32 1, %s1101_s18   ;;  %s31_s22 = sadd.s32 1, %s1097_s17 }
   0xc   : > { %s28_s23 = ssub.s32 %s1101_s18, %s1164_s21  ;;  %p38_p0 = scmp.ne.s32.totalorder %s1097_s17, %s1093_s16 }
   0xd   : > { %p29_p1 = scmp.eq.s32.totalorder %s28_s23, 0  ;;  %p39_p2 = scmp.eq.s32.totalorder %s1101_s18, 0 }
   0xe   : > { %p44_p3 = scmp.ne.s32.totalorder %s1093_s16, %s1089_s15  ;;  %p1524_p4 = scmp.eq.s32.totalorder %s1160_s19, 0 }
   0xf   : > { %s1176_s24 = scalar_select %p29_p1, %s1097_s17, %s31_s22  }
  0x10   : > { %p1178_p5 = por %p39_p2, %p38_p0  ;;  %p1184_p6 = por %p1524_p4, %p44_p3 }
  0x11   : > { %p141_p7 = scmp.eq.s32.totalorder %s1160_s19, 1  ;;  %p147_p8 = scmp.eq.s32.totalorder %s787_s20, 1 }
  0x12   : > { %s1529_s26 = scalar_select %p1184_p6, 1, 0 }
  0x13   : > { %p788_p9 = scmp.ge.s32.totalorder %s1101_s18, 1  ;;  %p154_p10 = scmp.lt.s32.totalorder %s1101_s18, 3 }
  0x14   : > { %p1191_p11 = por %p141_p7, %p38_p0  ;;  %p1195_p12 = por %p147_p8, %p44_p3 }
  0x15   : > { %p1199_p13 = pnand %p788_p9, %p154_p10  ;;  %s167_s6 = sshll.u32 %s1522_s3, 4  ;;  %s168_s6 = int_to_ptr.vmem [resolvable:$true] %s167_s6 }
  0x16   : > { %s1530_s27 = scalar_select %p1191_p11, 1, 0 }
  0x17   : > { %s1531_s28 = scalar_select %p1195_p12, 1, 0 }
  0x18   : > { %p887_p1 = pneg %p1199_p13  ;;  %p903_p2 = scmp.lt.s32.totalorder %s1101_s18, 2 }
  0x19   : > { %s1217_s8 = sand.u32 1, %s1097_s17   ;;  %s952_s11 = scalar_lea.vmem %s168_s6, 16 }
  0x1a   : > { %p1212_p7 = pnand %p887_p1, %p1524_p4  ;;  %p1221_p3 = pnand %p903_p2, %p1178_p5 }
  0x1b   : > { %s849_s10 = smul.u32 24, %s1217_s8  ;;  %p953_p8 = scmp.ne.s32.totalorder %s168_s6, %s952_s11 }
  0x1c   : > { %p954_p9 = pneg %p1212_p7  ;;  %p960_p1 = scmp.lt.s32.totalorder %s168_s6, %s168_s6 }
  0x1d   : > { %p961_p4 = scmp.lt.s32.totalorder %s952_s11, %s952_s11 }
  0x1e   : > { %p955_p10 = pnand %p954_p9, %p953_p8 }
  0x1f   : > { %p962_p12 = por %p961_p4, %p960_p1 }
  0x20   : > { %p956_p0 = pneg %p955_p10 }
  0x22   : > { %p963_p11 = pnand %p962_p12, %p956_p0 }
  0x24   : > { %966 = shalt.err (!%p963_p11)
}
  0x25   : > { %s1103_s12 = smov [#allocation8]   ;;  %s850_s13 = smul.u32 384, %s1101_s18 }
  0x26   : > { %890 = dma.vmem_to_smem (!%p1212_p7), %s168_s6, 16, %s1103_s12, [#allocation5]  }
  0x27   : > { %s182_s14 = scalar_lea.vmem [#allocation2], %s849_s10  ;;  %s1535_s0 = sld [smem:[#allocation14_spill]] }
  0x28   : > { %s189_s20 = sshll.u32 %s182_s14, 4  ;;  %s179_s30 = scalar_lea.sflag [#allocation3], %s1217_s8  ;;  %s1231_s20 = int_to_ptr.vmem [resolvable:$true] %s189_s20 }
  0x29   : > { %p969_p5 = pneg %p1221_p3 }
  0x2d   : > { %s1236_s25 = scalar_lea.hbm %s1535_s0, %s850_s13  ;;  %s972_s10 = scalar_lea.hbm %s1535_s0, 768 }
  0x2e   : > { %s967_s5 = scalar_lea.hbm %s1236_s25, 384  ;;  %p973_p0 = scmp.lt.u32.totalorder %s1236_s25, %s1535_s0 }
  0x2f   : > { %p968_p4 = scmp.ne.s32.totalorder %s1236_s25, %s967_s5  ;;  %p974_p2 = scmp.lt.u32.totalorder %s972_s10, %s967_s5 }
  0x30   : > { %p976_p8 = scmp.lt.u32.totalorder %s967_s5, %s1236_s25 }
  0x31   : > { %p970_p11 = pnand %p969_p5, %p968_p4  ;;  %p975_p7 = por %p974_p2, %p973_p0 }
  0x33   : > { %p971_p12 = pneg %p970_p11  ;;  %p977_p9 = por %p976_p8, %p975_p7 }
  0x35   : > { %p978_p10 = pnand %p977_p9, %p971_p12 }
  0x37   : > { %981 = shalt.err (!%p978_p10)
}
  0x38   : > { %s982_s13 = scalar_lea.vmem %s1231_s20, 384  ;;  %s1104_s14 = smov [#allocation2]  }
  0x39   : > { %p983_p1 = scmp.ne.s32.totalorder %s1231_s20, %s982_s13  ;;  %s987_s22 = sshll.u32 %s1104_s14, 4  ;;  %s988_s22 = int_to_ptr.vmem [resolvable:$false] %s987_s22 }
  0x3a   : > { %s989_s23 = scalar_lea.vmem %s988_s22, 768  ;;  %p990_p6 = scmp.lt.s32.totalorder %s1231_s20, %s988_s22 }
  0x3b   : > { %p985_p4 = pnand %p983_p1, %p969_p5  ;;  %p991_p0 = scmp.lt.s32.totalorder %s989_s23, %s982_s13 }
  0x3d   : > { %p986_p11 = pneg %p985_p4  ;;  %p992_p2 = por %p991_p0, %p990_p6 }
  0x3f   : > { %p993_p7 = pnand %p992_p2, %p986_p11 }
  0x41   : > { %996 = shalt.err (!%p993_p7)
}
  0x42   : > { %s1105_s5 = smov 128   ;;  %s1106_s6 = smov 8  }
  0x43   : > { %894 = dma.hbm_to_vmem [thread:$0]  (!%p1221_p3), %s1236_s25, 384, %s1231_s20, %s179_s30, %s1105_s5, %s1105_s5, %s1106_s6  }
  0x44   : > { %s792_s7 = sshll.u32 %s1217_s8, 5  ;;  %s814_s10 = sshll.u32 %s1101_s18, 9 }
  0x45   : > { %s1274_s13 = scalar_lea.hbm %s1520_s1, %s814_s10  ;;  %s203_s14 = scalar_lea.vmem [#allocation6], %s792_s7 }
  0x46   : > { %s210_s22 = sshll.u32 %s203_s14, 4  ;;  %s200_s23 = scalar_lea.sflag [#allocation7], %s1217_s8  ;;  %s1276_s22 = int_to_ptr.vmem [resolvable:$true] %s210_s22 }
  0x47   : > { %s997_s0 = scalar_lea.hbm %s1274_s13, 512  ;;  %s1002_s30 = scalar_lea.hbm %s1520_s1, 1024 }
  0x48   : > { %p998_p6 = scmp.ne.s32.totalorder %s1274_s13, %s997_s0  ;;  %p1003_p9 = scmp.lt.u32.totalorder %s1274_s13, %s1520_s1 }
  0x49   : > { %p1004_p10 = scmp.lt.u32.totalorder %s1002_s30, %s997_s0  ;;  %p1006_p4 = scmp.lt.u32.totalorder %s997_s0, %s1274_s13 }
  0x4a   : > { %p1000_p12 = pnand %p998_p6, %p969_p5 }
  0x4b   : > { %p1005_p1 = por %p1004_p10, %p1003_p9 }
  0x4c   : > { %p1001_p8 = pneg %p1000_p12 }
  0x4d   : > { %p1007_p11 = por %p1006_p4, %p1005_p1 }
  0x4f   : > { %p1008_p0 = pnand %p1007_p11, %p1001_p8 }
  0x51   : > { %1011 = shalt.err (!%p1008_p0)
}
  0x52   : > { %s1012_s7 = scalar_lea.vmem %s1276_s22, 512  ;;  %s1107_s12 = smov [#allocation6]  }
  0x53   : > { %p1013_p2 = scmp.ne.s32.totalorder %s1276_s22, %s1012_s7  ;;  %s1017_s14 = sshll.u32 %s1107_s12, 4  ;;  %s1018_s14 = int_to_ptr.vmem [resolvable:$false] %s1017_s14 }
  0x54   : > { %s1019_s20 = scalar_lea.vmem %s1018_s14, 1024  ;;  %p1020_p12 = scmp.lt.s32.totalorder %s1276_s22, %s1018_s14 }
  0x55   : > { %p1015_p7 = pnand %p1013_p2, %p969_p5  ;;  %p1021_p9 = scmp.lt.s32.totalorder %s1019_s20, %s1012_s7 }
  0x57   : > { %p1016_p6 = pneg %p1015_p7  ;;  %p1022_p10 = por %p1021_p9, %p1020_p12 }
  0x59   : > { %p1023_p1 = pnand %p1022_p10, %p1016_p6 }
  0x5b   : > { %1026 = shalt.err (!%p1023_p1)
}
  0x5c   : > { %897 = dma.hbm_to_vmem [thread:$0]  (!%p1221_p3), %s1274_s13, 512, %s1276_s22, %s200_s23, %s1105_s5, %s1105_s5, %s1106_s6  }
  0x5d   : > { %228 = sbr.rel (%p1199_p13) target bundleno = 870 (0x366), region = 36  ;;  %s1310_s0 = sand.u32 (!%p1199_p13), 1, %s1093_s16  }
  0x5e   : > { %s851_s25 = smul.u32 (!%p1199_p13), 24, %s1310_s0  ;;  %s231_s9 = scalar_lea.sflag (!%p1199_p13), [#allocation3], %s1310_s0 }
  0x5f   : > { %p1536_p5 = scmp.ne.s32.totalorder (!%p1199_p13), %s1529_s26, 0 }
  0x60   : > { %s1316_s30 = scalar_lea.vmem (!%p1199_p13), [#allocation2], %s851_s25 }
  0x64   : > { %1072 = dma.done.wait (%p1536_p5), %s231_s9, 384  }
  0x65   : > { %1074 = vsyncadd (%p1536_p5), %s231_s9, 4294966912  ;;  %s796_s29 = sshll.u32 %s1310_s0, 5  ;;  %s240_s8 = scalar_lea.sflag [#allocation7], %s1310_s0 }
  0x66   : > { %s243_s5 = scalar_lea.vmem [#allocation6], %s796_s29 }
  0x67   : > { %1076 = dma.done.wait (%p1536_p5), %s240_s8, 512  }
  0x68   : > { %1078 = vsyncadd (%p1536_p5), %s240_s8, 4294966784  ;;  %p1537_p13 = scmp.eq.s32.totalorder %s1160_s19, 0 }
  0x6a   : > { %1080 = dma.done.wait (%p1537_p13), [#allocation5], 16   ;;  %p1538_p3 = pmov %p1537_p13 }
  0x6c   : > { %1082 = vsyncadd (%p1538_p3), [#allocation5], 4294967280 }
  0x6d   : > { %252 = sfence }
  0x6e   : > { %v290_v0 = vld [vmem:[%s243_s5] sm:$0xff]  ;;  %v291_v1 = vld [vmem:[%s243_s5 + $0x8] sm:$0xff]  ;;  %v292_v2 = vld [vmem:[%s243_s5 + $0x10] sm:$0xff]  ;;  %v1108_v3 = vmov 0.0|0.0   ;;  %vm1109_vm0 = vmmov 0   ;;  %v1110_v6 = vmov 0.0   ;;  %v391_v14 = vlaneseq }
  0x6f   : > { %839 = vmatprep.subr.bf16.mxu0 %v1108_v3  ;;  %845 = vmatprep.subr.bf16.mxu1 %v1108_v3  ;;  %v840_v4 = vpack.c.bf16 %v291_v1, %v290_v0  ;;  %v293_v5 = vld [vmem:[%s243_s5 + $0x18] sm:$0xff]  ;;  %v284_v8 = vld [vmem:[%s1316_s30] sm:$0xff]  ;;  %vm301_vm1 = vcmask 261120   ;;  %p281_p8 = scmp.lt.s32.totalorder %s1160_s19, 1  ;;  %p1539_p11 = scmp.ne.s32.totalorder %s1530_s27, 0 }
  0x70   : > { %830 = vmatprep.mubr.msk.f32.mxu0 %vm1109_vm0, %v1110_v6  ;;  %833 = vmatprep.mubr.msk.f32.mxu1 %vm1109_vm0, %v1110_v6  ;;  %v843_v7 = vpack.c.bf16 %v293_v5, %v292_v2  ;;  %v285_v9 = vld [vmem:[%s1316_s30 + $0x8] sm:$0xff]  ;;  %v287_v10 = vmax.f32 %v284_v8, 0.0  ;;  %v286_v12 = vld [vmem:[%s1316_s30 + $0x10] sm:$0xff]  ;;  %v392_v15 = vshrl.u32 %v391_v14, 7 }
  0x71   : > { %841 = vmatpush3.bf16.msra.mxu0 %v840_v4  ;;  %847 = vmatpush3.bf16.msra.mxu1 %v840_v4  ;;  %v288_v11 = vmax.f32 %v285_v9, 0.0  ;;  %v289_v13 = vmax.f32 %v286_v12, 0.0  ;;  %s282_s26 = scalar_select %p281_p8, %s1160_s19, 1 }
  0x72   : > { %842 = vmatprep.subr.bf16.mxu0 %v1108_v3  ;;  %846 = vmatprep.subr.bf16.mxu1 %v1108_v3  ;;  %v393_v16 = vadd.s32 8, %v392_v15  ;;  %v1341_v17 = vmul.u32.u64.low 2863311531, %v392_v15  ;;  %v1342_v18 = vmul.u32.u64.high 2863311531, %v392_v15, %v1341_v17  ;;  %v394_v19 = vadd.s32 16, %v392_v15 }
  0x73   : > { %s283_s22 = scalar_lea.vmem %s1521_s2, %s282_s26 }
  0x74   : > { %v1344_v20 = vmul.u32.u64.low 2863311531, %v393_v16  ;;  %v1345_v21 = vmul.u32.u64.high 2863311531, %v393_v16, %v1344_v20  ;;  %v1347_v22 = vmul.u32.u64.low 2863311531, %v394_v19  ;;  %v1348_v23 = vmul.u32.u64.high 2863311531, %v394_v19, %v1347_v22  ;;  %v798_v38 = vld [vmem:[%s283_s22] ss:$0 sm:$0xff] }
  0x75   : > { %844 = vmatpush3.bf16.msra.mxu0 %v843_v7  ;;  %848 = vmatpush3.bf16.msra.mxu1 %v843_v7  ;;  %v401_v24 = vshrl.u32 %v1342_v18, 1  ;;  %s596_s22 = smul.u32 3, %s1160_s19 }
  0x76   : > { %v412_v25 = vshrl.u32 %v1345_v21, 1  ;;  %v423_v28 = vshrl.u32 %v1348_v23, 1 }
  0x77   : > { %v402_v26 = vmul.u32 3, %v401_v24 }
  0x78   : > { %831 = vmatmul.mubr.msk.f32.vlgmr.msra.gmra.mrb[0].mxu0 %vm301_vm1, %v287_v10  ;;  %834 = vmatmul.mubr.msk.f32.vlgmr.msra.gmra.mrb[0].mxu1 %vm301_vm1, %v288_v11  ;;  %v413_v27 = vmul.u32 3, %v412_v25  ;;  %v424_v31 = vmul.u32 3, %v423_v28 }
  0x79   : > { %836 = vmatprep.mubr.msk.f32.mxu1 %vm1109_vm0, %v1110_v6  ;;  %v403_v29 = vsub.s32 %v392_v15, %v402_v26 }
  0x7a   : > { %v414_v30 = vsub.s32 %v393_v16, %v413_v27  ;;  %v425_v32 = vsub.s32 %v394_v19, %v424_v31 }
  0x7b   : > { %vm428_vm2 = vcmp.ne.s32.totalorder %v403_v29, 0  ;;  %vm431_vm3 = vcmp.lt.s32.totalorder %v403_v29, 0  ;;  %v437_v33 = vadd.s32 3, %v403_v29 }
  0x7c   : > { %837 = vmatmul.mubr.msk.f32.gmra.mrb[2].mxu1 %vm301_vm1, %v289_v13  ;;  %vm429_vm4 = vcmp.ne.s32.totalorder %v414_v30, 0  ;;  %vm432_vm5 = vcmp.lt.s32.totalorder %v414_v30, 0  ;;  %vm434_vm6 = vmand %vm431_vm3, %vm428_vm2  ;;  %v438_v34 = vadd.s32 3, %v414_v30  ;;  %vm430_vm8 = vcmp.ne.s32.totalorder %v425_v32, 0 }
  0x7d   : > { %vm435_vm7 = vmand %vm432_vm5, %vm429_vm4  ;;  %vm433_vm9 = vcmp.lt.s32.totalorder %v425_v32, 0  ;;  %v439_v35 = vadd.s32 3, %v425_v32  ;;  %v440_v36 = vsel %vm434_vm6, %v437_v33, %v403_v29 }
  0x7e   : > { %v441_v37 = vsel %vm435_vm7, %v438_v34, %v414_v30  ;;  %vm436_vm10 = vmand %vm433_vm9, %vm430_vm8  ;;  %vm461_vm11 = vcmp.eq.s32.totalorder %v440_v36, 2  ;;  %vm443_vm13 = vcmp.eq.s32.totalorder %v440_v36, 0  ;;  %vm452_vm15 = vcmp.eq.s32.totalorder %v440_v36, 1 }
  0x7f   : > { %vm462_vm12 = vcmp.eq.s32.totalorder %v441_v37, 2  ;;  %vm444_vm14 = vcmp.eq.s32.totalorder %v441_v37, 0  ;;  %v442_v39 = vsel %vm436_vm10, %v439_v35, %v425_v32  ;;  %vm453_vm0 = vcmp.eq.s32.totalorder %v441_v37, 1 }
  0x80   : > { %v1359_v42 = vsel %vm461_vm11, 1.0, %v1110_v6  ;;  %v1362_v43 = vsel %vm462_vm12, 1.0, %v1110_v6  ;;  %v1365_v44 = vsel %vm443_vm13, 1.0, %v1110_v6  ;;  %v1368_v45 = vsel %vm444_vm14, 1.0, %v1110_v6 }
  0x81   : > { %vm463_vm1 = vcmp.eq.s32.totalorder %v442_v39, 2  ;;  %vm445_vm2 = vcmp.eq.s32.totalorder %v442_v39, 0  ;;  %vm454_vm3 = vcmp.eq.s32.totalorder %v442_v39, 1  ;;  %v1375_v50 = vsel %vm452_vm15, 1.0, %v1110_v6 }
  0x82   : > { %v1378_v51 = vsel %vm453_vm0, 1.0, %v1110_v6  ;;  %v1389_v57 = vsel %vm463_vm1, 1.0, %v1110_v6  ;;  %v1392_v58 = vsel %vm445_vm2, 1.0, %v1110_v6  ;;  %v1397_v61 = vsel %vm454_vm3, 1.0, %v1110_v6 }
 0x14b   : > { %v377_v40 = vpop.f32.mrb[0].mxu0  ;;  %v382_v41 = vpop.f32.mrb[0].mxu1 }
 0x14c   : > { %v1370_v46 = vadd.f32 %v798_v38, %v377_v40  ;;  %v1372_v47 = vadd.f32 %v798_v38, %v382_v41  ;;  %v835_v48 = vpop.f32.mrb[1].mxu1  ;;  %v832_v49 = vpop.f32.mrb[1].mxu0 }
 0x14e   : > { %v500_v52 = vmul.f32 %v1359_v42, %v1370_v46  ;;  %v501_v53 = vmul.f32 %v1362_v43, %v1372_v47  ;;  %v470_v54 = vmul.f32 %v1365_v44, %v1370_v46  ;;  %v471_v55 = vmul.f32 %v1368_v45, %v1372_v47 }
 0x14f   : > { %v387_v56 = vpop.f32.mrb[2].mxu1  ;;  %v485_v62 = vmul.f32 %v1375_v50, %v1370_v46  ;;  %v486_v63 = vmul.f32 %v1378_v51, %v1372_v47 }
 0x150   : > { %v1394_v59 = vadd.f32 %v798_v38, %v387_v56  ;;  %v838_v60 = vpop.f32.mrb[3].mxu1  ;;  %v503_v1 = vadd.f32 %v501_v53, %v500_v52  ;;  %v473_v3 = vadd.f32 %v471_v55, %v470_v54 }
 0x151   : > { %v488_v7 = vadd.f32 %v486_v63, %v485_v62 }
 0x152   : > { %v502_v0 = vmul.f32 %v1389_v57, %v1394_v59  ;;  %v472_v2 = vmul.f32 %v1392_v58, %v1394_v59  ;;  %v487_v6 = vmul.f32 %v1397_v61, %v1394_v59 }
 0x154   : > { %v504_v4 = vadd.f32 %v503_v1, %v502_v0  ;;  %v474_v5 = vadd.f32 %v473_v3, %v472_v2  ;;  %v489_v8 = vadd.f32 %v488_v7, %v487_v6 }
 0x156   : > { %505 = vadd.xlane.f32.xlu1 %v504_v4  ;;  %475 = vadd.xlane.f32.xlu0 %v474_v5 }
 0x15a   : > { %490 = vadd.xlane.f32.xlu0 %v489_v8 }
 0x1e3   : > { %v506_v9 = vpop.xlane.xlu1 %505  ;;  %v476_v10 = vpop.xlane.xlu0 %475 }
 0x1e4   : > { %v507_v11 = vrot.slane %v506_v9, 4  ;;  %v477_v12 = vrot.slane %v476_v10, 4 }
 0x1e6   : > { %v508_v13 = vadd.f32 %v507_v11, %v506_v9  ;;  %v478_v14 = vadd.f32 %v477_v12, %v476_v10 }
 0x1e7   : > { %v491_v15 = vpop.xlane.xlu0 %490 }
 0x1e8   : > { %v509_v16 = vrot.slane %v508_v13, 2  ;;  %v479_v17 = vrot.slane %v478_v14, 2  ;;  %v492_v18 = vrot.slane %v491_v15, 4 }
 0x1ea   : > { %v493_v19 = vadd.f32 %v492_v18, %v491_v15  ;;  %v480_v20 = vadd.f32 %v479_v17, %v478_v14  ;;  %v510_v21 = vadd.f32 %v509_v16, %v508_v13 }
 0x1ec   : > { %v494_v22 = vrot.slane %v493_v19, 2  ;;  %v481_v23 = vrot.slane %v480_v20, 1  ;;  %v511_v26 = vrot.slane %v510_v21, 1 }
 0x1ee   : > { %v482_v24 = vadd.f32 %v481_v23, %v480_v20  ;;  %v495_v25 = vadd.f32 %v494_v22, %v493_v19  ;;  %v512_v29 = vadd.f32 %v511_v26, %v510_v21 }
 0x1f0   : > { %858 = vpush %v482_v24  ;;  %v496_v27 = vrot.slane %v495_v25, 1 }
 0x1f2   : > { %v497_v28 = vadd.f32 %v496_v27, %v495_v25 }
 0x1f4   : > { %860 = vpush %v497_v28 }
 0x1f5   : > { %862 = vpush %v512_v29 }
 0x221   : > { %s859_s23 = spop %858 }
 0x222   : > { %s484_s10 = smul.f32 0.0009765625, %s859_s23  ;;  %s623_s23 = sadd.s32 6, %s596_s22 }
 0x224   : > { %v515_v30 = vstv %s484_s10  ;;  %s629_s10 = sadd.s32 7, %s596_s22 }
 0x225   : > { %s861_s11 = spop %860  ;;  %v516_v31 = vmul.f32 %v1365_v44, %v515_v30  ;;  %v517_v32 = vmul.f32 %v1368_v45, %v515_v30  ;;  %v518_v33 = vmul.f32 %v1392_v58, %v515_v30 }
 0x226   : > { %s499_s7 = smul.f32 0.0009765625, %s861_s11  ;;  %s863_s12 = spop %862 }
 0x227   : > { %s514_s14 = smul.f32 0.0009765625, %s863_s12  ;;  %s624_s11 = sld [smem:[#allocation8 + %s623_s23]] }
 0x228   : > { %v519_v34 = vstv %s499_s7  ;;  %s630_s7 = sld [smem:[#allocation8 + %s629_s10]]  ;;  %s638_s12 = sadd.s32 8, %s596_s22 }
 0x229   : > { %v520_v35 = vmul.f32 %v1375_v50, %v519_v34  ;;  %v521_v36 = vmul.f32 %v1378_v51, %v519_v34  ;;  %v522_v37 = vmul.f32 %v1397_v61, %v519_v34  ;;  %v526_v38 = vstv %s514_s14  ;;  %s603_s14 = sadd.s32 1, %s596_s22  ;;  %s876_s10 = smul.u32 384, %s1160_s19 }
 0x22a   : > { %v527_v39 = vmul.f32 %v1359_v42, %v526_v38  ;;  %v528_v40 = vmul.f32 %v1362_v43, %v526_v38  ;;  %v529_v52 = vmul.f32 %v1389_v57, %v526_v38  ;;  %s657_s19 = scalar_lea.sflag [#allocation4], %s1310_s0 }
 0x22b   : > { %v523_v41 = vadd.f32 %v520_v35, %v516_v31  ;;  %v524_v48 = vadd.f32 %v521_v36, %v517_v32  ;;  %v525_v49 = vadd.f32 %v522_v37, %v518_v33 }
 0x22d   : > { %v530_v53 = vadd.f32 %v527_v39, %v523_v41  ;;  %v531_v54 = vadd.f32 %v528_v40, %v524_v48  ;;  %v532_v55 = vadd.f32 %v529_v52, %v525_v49  ;;  %v625_v41 = vstv %s624_s11  ;;  %s280_s11 = scalar_lea.vmem [#allocation9], %s851_s25 }
 0x22e   : > { %v631_v48 = vstv %s630_s7  ;;  %v626_v49 = vmul.f32 %v1365_v44, %v625_v41  ;;  %v627_v52 = vmul.f32 %v1368_v45, %v625_v41  ;;  %s670_s7 = sshll.u32 %s280_s11, 4  ;;  %s1475_s7 = int_to_ptr.vmem [resolvable:$true] %s670_s7 }
 0x22f   : > { %v1419_v56 = vsub.f32 %v1370_v46, %v530_v53  ;;  %v1422_v60 = vsub.f32 %v1372_v47, %v531_v54  ;;  %v1425_v62 = vsub.f32 %v1394_v59, %v532_v55  ;;  %v632_v53 = vmul.f32 %v1375_v50, %v631_v48  ;;  %s1027_s25 = scalar_lea.vmem %s1475_s7, 384 }
 0x230   : > { %v633_v54 = vmul.f32 %v1378_v51, %v631_v48  ;;  %p1028_p4 = scmp.ne.s32.totalorder %s1475_s7, %s1027_s25 }
 0x231   : > { %v536_v63 = vmul.f32 %v1419_v56, %v1419_v56  ;;  %v537_v0 = vmul.f32 %v1422_v60, %v1422_v60  ;;  %v538_v1 = vmul.f32 %v1425_v62, %v1425_v62 }
 0x232   : > { %p1029_p0 = pnand %p1028_p4, %p1539_p11 }
 0x233   : > { %v554_v2 = vmul.f32 %v1375_v50, %v536_v63  ;;  %v555_v46 = vmul.f32 %v1378_v51, %v537_v0  ;;  %v539_v3 = vmul.f32 %v1365_v44, %v536_v63  ;;  %v540_v47 = vmul.f32 %v1368_v45, %v537_v0 }
 0x234   : > { %v569_v59 = vmul.f32 %v1359_v42, %v536_v63  ;;  %v570_v4 = vmul.f32 %v1362_v43, %v537_v0  ;;  %v556_v5 = vmul.f32 %v1397_v61, %v538_v1  ;;  %v541_v7 = vmul.f32 %v1392_v58, %v538_v1  ;;  %p1030_p2 = pneg %p1029_p0 }
 0x235   : > { %v557_v6 = vadd.f32 %v555_v46, %v554_v2  ;;  %v542_v8 = vadd.f32 %v540_v47, %v539_v3  ;;  %v571_v12 = vmul.f32 %v1389_v57, %v538_v1  ;;  %v628_v63 = vmul.f32 %v1392_v58, %v625_v41 }
 0x236   : > { %v572_v11 = vadd.f32 %v570_v4, %v569_v59  ;;  %v634_v0 = vmul.f32 %v1397_v61, %v631_v48  ;;  %v635_v2 = vadd.f32 %v632_v53, %v626_v49  ;;  %v636_v46 = vadd.f32 %v633_v54, %v627_v52 }
 0x237   : > { %v558_v9 = vadd.f32 %v557_v6, %v556_v5  ;;  %v543_v10 = vadd.f32 %v542_v8, %v541_v7 }
 0x238   : > { %v573_v13 = vadd.f32 %v572_v11, %v571_v12 }
 0x239   : > { %559 = vadd.xlane.f32.xlu0 %v558_v9  ;;  %544 = vadd.xlane.f32.xlu1 %v543_v10  ;;  %v637_v10 = vadd.f32 %v634_v0, %v628_v63 }
 0x23d   : > { %574 = vadd.xlane.f32.xlu1 %v573_v13 }
 0x2c6   : > { %v560_v14 = vpop.xlane.xlu0 %559  ;;  %v545_v16 = vpop.xlane.xlu1 %544 }
 0x2c7   : > { %v561_v15 = vrot.slane %v560_v14, 4  ;;  %v546_v17 = vrot.slane %v545_v16, 4 }
 0x2c9   : > { %v562_v18 = vadd.f32 %v561_v15, %v560_v14  ;;  %v547_v19 = vadd.f32 %v546_v17, %v545_v16 }
 0x2ca   : > { %v575_v21 = vpop.xlane.xlu1 %574 }
 0x2cb   : > { %v563_v20 = vrot.slane %v562_v18, 2  ;;  %v548_v22 = vrot.slane %v547_v19, 2  ;;  %v576_v23 = vrot.slane %v575_v21, 4 }
 0x2cd   : > { %v564_v24 = vadd.f32 %v563_v20, %v562_v18  ;;  %v577_v25 = vadd.f32 %v576_v23, %v575_v21  ;;  %v549_v26 = vadd.f32 %v548_v22, %v547_v19 }
 0x2cf   : > { %v565_v27 = vrot.slane %v564_v24, 1  ;;  %v578_v28 = vrot.slane %v577_v25, 2  ;;  %v550_v29 = vrot.slane %v549_v26, 1 }
 0x2d1   : > { %v566_v30 = vadd.f32 %v565_v27, %v564_v24  ;;  %v579_v31 = vadd.f32 %v578_v28, %v577_v25  ;;  %v551_v32 = vadd.f32 %v550_v29, %v549_v26 }
 0x2d3   : > { %864 = vpush %v551_v32  ;;  %v580_v33 = vrot.slane %v579_v31, 1 }
 0x2d4   : > { %866 = vpush %v566_v30 }
 0x2d5   : > { %v581_v34 = vadd.f32 %v580_v33, %v579_v31 }
 0x2d7   : > { %868 = vpush %v581_v34 }
 0x304   : > { %s865_s20 = spop %864 }
 0x305   : > { %s553_s9 = smul.f32 0.0009765625, %s865_s20  ;;  %s867_s30 = spop %866 }
 0x306   : > { %s568_s29 = smul.f32 0.0009765625, %s867_s30  ;;  %s639_s20 = sld [smem:[#allocation8 + %s638_s12]] }
 0x307   : > { %s584_s8 = sadd.f32 1e-05, %s553_s9  ;;  %s597_s9 = sld [smem:[#allocation8 + %s596_s22]] }
 0x308   : > { %s588_s5 = sadd.f32 1e-05, %s568_s29  ;;  %s869_s26 = spop %868 }
 0x309   : > { %v585_v35 = vstv %s584_s8  ;;  %s583_s6 = smul.f32 0.0009765625, %s869_s26  ;;  %s604_s30 = sld [smem:[#allocation8 + %s603_s14]] }
 0x30a   : > { %946 = vrsqrt.f32 %v585_v35  ;;  %v589_v36 = vstv %s588_s5  ;;  %s613_s29 = sadd.s32 2, %s596_s22 }
 0x30b   : > { %948 = vrsqrt.f32 %v589_v36  ;;  %s592_s13 = sadd.f32 1e-05, %s583_s6  ;;  %s1443_s8 = sld [smem:[#allocation8 + %s613_s29]] }
 0x30c   : > { %v640_v55 = vstv %s639_s20  ;;  %s1473_s20 = scalar_lea.hbm %s1523_s4, %s876_s10 }
 0x30d   : > { %v593_v37 = vstv %s592_s13  ;;  %v641_v3 = vmul.f32 %v1359_v42, %v640_v55  ;;  %v642_v9 = vmul.f32 %v1362_v43, %v640_v55 }
 0x30e   : > { %950 = vrsqrt.f32 %v593_v37 }
 0x30f   : > { %v645_v15 = vadd.f32 %v642_v9, %v636_v46 }
 0x314   : > { %v947_v38 = vpop.eup %946 }
 0x315   : > { %v949_v39 = vpop.eup %948  ;;  %870 = vpush %v947_v38 }
 0x316   : > { %872 = vpush %v949_v39 }
 0x318   : > { %v951_v40 = vpop.eup %950 }
 0x319   : > { %874 = vpush %v951_v40 }
 0x346   : > { %s871_s5 = spop %870 }
 0x347   : > { %s598_s26 = smul.f32 %s871_s5, %s597_s9  ;;  %s873_s6 = spop %872 }
 0x348   : > { %s605_s13 = smul.f32 %s873_s6, %s604_s30  ;;  %s1111_s9 = smov [#allocation9]  }
 0x349   : > { %v599_v1 = vstv %s598_s26  ;;  %s1031_s30 = sshll.u32 %s1111_s9, 4  ;;  %s1032_s30 = int_to_ptr.vmem [resolvable:$false] %s1031_s30 }
 0x34a   : > { %v600_v47 = vmul.f32 %v1365_v44, %v599_v1  ;;  %v601_v59 = vmul.f32 %v1368_v45, %v599_v1  ;;  %v602_v4 = vmul.f32 %v1392_v58, %v599_v1  ;;  %v606_v5 = vstv %s605_s13  ;;  %s875_s22 = spop %874  ;;  %s1033_s29 = scalar_lea.vmem %s1032_s30, 768 }
 0x34b   : > { %v607_v6 = vmul.f32 %v1375_v50, %v606_v5  ;;  %v608_v7 = vmul.f32 %v1378_v51, %v606_v5  ;;  %v609_v8 = vmul.f32 %v1397_v61, %v606_v5  ;;  %s615_s23 = smul.f32 %s875_s22, %s1443_s8  ;;  %v643_v44 = vmul.f32 %v1389_v57, %v640_v55  ;;  %p1034_p7 = scmp.lt.s32.totalorder %s1475_s7, %s1032_s30 }
 0x34c   : > { %v644_v51 = vadd.f32 %v641_v3, %v635_v2  ;;  %p1035_p6 = scmp.lt.s32.totalorder %s1033_s29, %s1027_s25 }
 0x34d   : > { %v610_v11 = vadd.f32 %v607_v6, %v600_v47  ;;  %v611_v45 = vadd.f32 %v608_v7, %v601_v59  ;;  %v616_v12 = vstv %s615_s23  ;;  %v612_v58 = vadd.f32 %v609_v8, %v602_v4 }
 0x34e   : > { %v617_v13 = vmul.f32 %v1359_v42, %v616_v12  ;;  %v618_v50 = vmul.f32 %v1362_v43, %v616_v12  ;;  %v619_v14 = vmul.f32 %v1389_v57, %v616_v12  ;;  %v646_v18 = vadd.f32 %v643_v44, %v637_v10  ;;  %p1036_p12 = por %p1035_p6, %p1034_p7 }
 0x350   : > { %v620_v61 = vadd.f32 %v617_v13, %v610_v11  ;;  %v621_v16 = vadd.f32 %v618_v50, %v611_v45  ;;  %v622_v17 = vadd.f32 %v619_v14, %v612_v58  ;;  %p1037_p9 = pnand %p1036_p12, %p1030_p2 }
 0x352   : > { %v647_v19 = vmul.f32 %v620_v61, %v1419_v56  ;;  %v648_v42 = vmul.f32 %v621_v16, %v1422_v60  ;;  %v649_v43 = vmul.f32 %v622_v17, %v1425_v62 }
 0x354   : > { %v650_v57 = vadd.f32 %v647_v19, %v644_v51  ;;  %v651_v20 = vadd.f32 %v648_v42, %v645_v15  ;;  %v652_v21 = vadd.f32 %v649_v43, %v646_v18 }
 0x356   : > { %653 = vst [vmem:[%s280_s11] sm:$0xff] %v650_v57  ;;  %654 = vst [vmem:[%s280_s11 + $0x8] sm:$0xff] %v651_v20 }
 0x357   : > { %655 = vst [vmem:[%s280_s11 + $0x10] sm:$0xff] %v652_v21 }
 0x358   : > { %1040 = shalt.err (!%p1037_p9)
}
 0x359   : > { %s1041_s8 = scalar_lea.hbm %s1473_s20, 384  ;;  %s1045_s6 = scalar_lea.hbm %s1523_s4, 768 }
 0x35a   : > { %p1042_p10 = scmp.ne.s32.totalorder %s1473_s20, %s1041_s8  ;;  %p1046_p13 = scmp.lt.u32.totalorder %s1473_s20, %s1523_s4 }
 0x35b   : > { %p1047_p3 = scmp.lt.u32.totalorder %s1045_s6, %s1041_s8  ;;  %p1049_p4 = scmp.lt.u32.totalorder %s1041_s8, %s1473_s20 }
 0x35c   : > { %p1043_p1 = pnand %p1042_p10, %p1539_p11 }
 0x35d   : > { %p1048_p8 = por %p1047_p3, %p1046_p13 }
 0x35e   : > { %p1044_p5 = pneg %p1043_p1 }
 0x35f   : > { %p1050_p0 = por %p1049_p4, %p1048_p8 }
 0x361   : > { %p1051_p2 = pnand %p1050_p0, %p1044_p5 }
 0x363   : > { %1054 = shalt.err (!%p1051_p2)
}
 0x364   : > { %s1112_s23 = smov 128   ;;  %s1113_s10 = smov 8  }
 0x365   : > { %885 = dma.vmem_to_hbm [thread:$0]  (%p1539_p11), %s1475_s7, 384, %s1473_s20, %s657_s19, %s1112_s23, %s1112_s23, %s1113_s10  }
 0x366 PF: > { %s685_s11 = sand.u32 1, %s1089_s15   ;;  %p1540_p7 = scmp.ne.s32.totalorder %s1531_s28, 0 }
 0x367   : > { %p1541_p6 = scmp.ge.s32.totalorder %s1101_s18, 2  ;;  %s686_s12 = scalar_lea.sflag [#allocation4], %s685_s11 }
 0x369   : > { %p899_p12 = pnand %p1541_p6, %p1540_p7 }
 0x36b   : > { %1084 = dma.done.wait (!%p899_p12), %s686_s12, 384  }
 0x36c   : > { %1086 = vsyncadd (!%p899_p12), %s686_s12, 4294966912  ;;  %p21_p9 = scmp.ge.s32.totalorder %s1164_s21, 4   ;;  %s1542_s15 = smov %s1093_s16 }
 0x36d   : > { %s1543_s16 = smov %s1097_s17  ;;  %s1544_s17 = smov %s1176_s24 }
 0x36e   : > { %s1545_s18 = smov %s1164_s21  ;;  %23 = sbr.rel (!%p21_p9) target bundleno = 10 (0xa), region = 102 }
 0x375   :  { %691 = vsyncpa [#allocation3], 1 }
 0x376   :  { %693 = vsyncpa [#allocation3 + $0x1], 1 }
 0x377   :  { %694 = vsyncpa [#allocation7], 1 }
 0x378   :  { %696 = vsyncpa [#allocation7 + $0x1], 1 }
 0x379   :  { %697 = vsyncpa [#allocation4], 1 }
 0x37a   :  { %699 = vsyncpa [#allocation4 + $0x1], 1 }
 0x37b   :  { %700 = vsyncpa [#allocation5], 1 }
 0x37c   :  { %702 = vsyncpa [#allocation5 + $0x1], 1 }

</bundles_post_ra>
